<compile_context>
chip_gen: v6e
topology: v6e:2x2x1
jax: 0.10.0
libtpu: 0.0.40
codegen_flags: <defaults>
</compile_context>

<pallas_src>
import jax
import jax.numpy as jnp
from jax.experimental import pallas as pl
from jax.experimental.pallas import tpu as pltpu

_LANE = 1024        # lane-dense last dim: large multiple of 128 (unmasked vst)
_TILE_M_MAX = 512   # 512 x 1024 f32 block = 2 MiB; ~8 MiB live with
                    # double-buffered in+out -> safe on v5e/v6e/v7x defaults.


def _make_lambda_kernel(lambd_fn):
    """Build a Pallas kernel body applying `lambd_fn` elementwise to a block."""

    def kernel(x_ref, o_ref):
        o_ref[...] = lambd_fn(x_ref[...]).astype(o_ref.dtype)

    return kernel


def pallas_lambda(x, lambd_fn):
    """Pallas-backed equivalent of Lambda(lambd).forward(x) for elementwise lambd.

    Works for any input shape: the array is flattened to a lane-dense
    (rows, 1024) slab, processed in VMEM-budget-sized row tiles, and reshaped
    back to the original shape.
    """
    orig_shape = x.shape
    flat = x.reshape(-1)
    total = flat.size

    # Output dtype follows what lambd produces (elementwise).
    out_dtype = jax.eval_shape(
        lambd_fn, jax.ShapeDtypeStruct((), x.dtype)).dtype

    # Pad the flat vector to a whole number of lane-dense rows (<=1023 elems;
    # skipped entirely when total is already a multiple of _LANE).
    pad_to_lane = (-total) % _LANE
    if pad_to_lane:
        flat = jnp.pad(flat, (0, pad_to_lane))
    rows = flat.size // _LANE

    if rows <= _TILE_M_MAX:
        # Single block covering the whole (rows, _LANE) slab; block dims equal
        # the full array dims, so the (8,128) divisibility rule is trivially
        # satisfied and the grid has exactly one step (optimal for tiny
        # inputs like the demo tensor).
        tile_m = rows
        grid = (1,)
    else:
        # Tile rows; tile_m (512) is a multiple of 8 and lane (1024) a
        # multiple of 128, so block shape is legal even when it does not
        # divide `rows` — Pallas masks the partial edge block, no row
        # padding / extra HBM copy needed.
        tile_m = _TILE_M_MAX
        grid = (pl.cdiv(rows, tile_m),)

    slab = flat.reshape(rows, _LANE)

    out = pl.pallas_call(
        _make_lambda_kernel(lambd_fn),
        out_shape=jax.ShapeDtypeStruct((rows, _LANE), out_dtype),
        grid=grid,
        in_specs=[pl.BlockSpec((tile_m, _LANE), lambda i: (i, 0))],
        out_specs=pl.BlockSpec((tile_m, _LANE), lambda i: (i, 0)),
        compiler_params=pltpu.CompilerParams(
            dimension_semantics=("parallel",),
        ),
    )(slab)

    return out.reshape(-1)[:total].reshape(orig_shape)


if __name__ == "__main__":
    # Deterministic small input consistent with an NCHW conv-style tensor.
    key = jax.random.PRNGKey(0)
    x = jax.random.normal(key, (2, 4, 16, 16), dtype=jnp.float32)

    # Concrete lambd used to instantiate the Lambda module.
    lambd = lambda t: 2.0 * t + 1.0

    out = pallas_lambda(x, lambd)
    out = jax.block_until_ready(out)

    # Reference check in plain JAX (same semantics as PyTorch Lambda.forward).
    ref = lambd(x)
    assert out.shape == ref.shape and out.dtype == ref.dtype
    assert jnp.allclose(out, ref, atol=1e-6, rtol=1e-6)

    print("KERNEL_OK")
</pallas_src>

<mosaic_0001>
module attributes {stable_mosaic.version = 11 : i64} {
  func.func @kernel(%arg0: i32, %arg1: memref<2x1024xf32, #tpu.memory_space<vmem>>, %arg2: memref<2x1024xf32, #tpu.memory_space<vmem>>) attributes {dimension_semantics = [#tpu.dimension_semantics<parallel>], iteration_bounds = array<i64: 1>, scalar_prefetch = 0 : i64, scratch_operands = 0 : i64, tpu.core_type = #tpu.core_type<tc>, window_params = [{transform_indices = @transform_0, window_bounds = array<i64: 2, 1024>}, {transform_indices = @transform_1, window_bounds = array<i64: 2, 1024>}]} {
    %c0 = arith.constant 0 : index
    %c0_0 = arith.constant 0 : index
    %0 = vector.load %arg1[%c0, %c0_0] : memref<2x1024xf32, #tpu.memory_space<vmem>>, vector<2x1024xf32>
    %cst = arith.constant 2.000000e+00 : f32
    %1 = vector.broadcast %cst : f32 to vector<2x1024xf32>
    %2 = arith.mulf %1, %0 : vector<2x1024xf32>
    %cst_1 = arith.constant 1.000000e+00 : f32
    %3 = vector.broadcast %cst_1 : f32 to vector<2x1024xf32>
    %4 = arith.addf %2, %3 : vector<2x1024xf32>
    %c0_2 = arith.constant 0 : index
    %c0_3 = arith.constant 0 : index
    %5 = vector.load %arg2[%c0_2, %c0_3] : memref<2x1024xf32, #tpu.memory_space<vmem>>, vector<2x1024xf32>
    tpu.vector_store %arg2[%c0_2, %c0_3], %4 {strides = array<i32>} : memref<2x1024xf32, #tpu.memory_space<vmem>>, vector<2x1024xf32>,
    return
  }
  func.func @transform_0(%arg0: i32) -> (i32, i32) {
    %c0_i32 = arith.constant 0 : i32
    %c0_i32_0 = arith.constant 0 : i32
    return %arg0, %c0_i32 : i32, i32
  }
  func.func @transform_1(%arg0: i32) -> (i32, i32) {
    %c0_i32 = arith.constant 0 : i32
    %c0_i32_0 = arith.constant 0 : i32
    return %arg0, %c0_i32 : i32, i32
  }
}

</mosaic_0001>

<bundles_post_ra>
// kernel: tpu_custom_call.1
= control target key start
LH: loop header
LB: loop body
LE: loop exit
PB: predicated region body
PF: predicated region fallthrough
CT: control target
= control target key end

     0   :  { %6 = vsyncpa [#allocation3], 0  ;;  %s108_s0 = inlined_call_operand.hbm [shape: f32[2,1024], index: 0, kind: input, shape index: {}]   ;;  %s109_s1 = inlined_call_operand.hbm [shape: f32[2,1024], index: 1, kind: output, shape index: {}]  }
   0x1   :  { %7 = vsyncpa [#allocation4], 0  ;;  %s90_s6 = smov [#allocation2]  }
   0x2   :  { %s14_s7 = sshll.u32 %s90_s6, 4  ;;  %s15_s7 = int_to_ptr.vmem [resolvable:$true] %s14_s7 }
   0x3   :  { %s54_s8 = scalar_lea.vmem %s15_s7, 256  ;;  %p59_p1 = scmp.lt.s32.totalorder %s15_s7, %s15_s7 }
   0x4   :  { %p55_p0 = scmp.ne.s32.totalorder %s15_s7, %s54_s8  ;;  %p60_p2 = scmp.lt.s32.totalorder %s54_s8, %s54_s8 }
   0x6   :  { %p61_p3 = por %p60_p2, %p59_p1 }
   0x8   :  { %p62_p4 = pnand %p61_p3, %p55_p0 }
   0xa   :  { %65 = shalt.err (!%p62_p4)
}
   0xb   :  { %17 = dma.hbm_to_vmem [thread:$0]  %s108_s0, 256, %s15_s7, [#allocation3]  }
   0xc   :  { %86 = dma.done.wait [#allocation3], 256  }
   0xd   :  { %87 = vsyncadd [#allocation3], 4294967040  ;;  %v21_v0 = vld [vmem:[#allocation2] sm:$0xff]  ;;  %v22_v1 = vld [vmem:[#allocation2 + $0x8] sm:$0xff]  ;;  %s91_s11 = smov [#allocation5]  }
   0xe   :  { %s35_s12 = sshll.u32 %s91_s11, 4  ;;  %v23_v2 = vmul.f32 2.0, %v21_v0  ;;  %v24_v3 = vmul.f32 2.0, %v22_v1  ;;  %s36_s12 = int_to_ptr.vmem [resolvable:$true] %s35_s12 }
   0xf   :  { %s66_s13 = scalar_lea.vmem %s36_s12, 256  ;;  %p71_p6 = scmp.lt.s32.totalorder %s36_s12, %s36_s12 }
  0x10   :  { %v25_v4 = vadd.f32 1.0, %v23_v2  ;;  %v26_v5 = vadd.f32 1.0, %v24_v3  ;;  %p67_p5 = scmp.ne.s32.totalorder %s36_s12, %s66_s13  ;;  %p72_p7 = scmp.lt.s32.totalorder %s66_s13, %s66_s13 }
  0x12   :  { %27 = vst [vmem:[#allocation5] sm:$0xff] %v25_v4  ;;  %28 = vst [vmem:[#allocation5 + $0x8] sm:$0xff] %v26_v5  ;;  %p73_p8 = por %p72_p7, %p71_p6 }
  0x14   :  { %p74_p9 = pnand %p73_p8, %p67_p5 }
  0x16   :  { %77 = shalt.err (!%p74_p9)
}
  0x17   :  { %38 = dma.vmem_to_hbm [thread:$0]  %s36_s12, 256, %s109_s1, [#allocation4]  }
  0x18   :  { %88 = dma.done.wait [#allocation4], 256  }
  0x19   :  { %89 = vsyncadd [#allocation4], 4294967040 }
  0x1a   :  { %42 = vsyncpa [#allocation3], 1 }
  0x1b   :  { %43 = vsyncpa [#allocation4], 1 }

</bundles_post_ra>
